<compile_context>
chip_gen: v6e
topology: v6e:2x2x1
jax: 0.10.0
libtpu: 0.0.40
codegen_flags: <defaults>
</compile_context>

<pallas_src>
from functools import partial

import jax
import jax.numpy as jnp
from jax.experimental import pallas as pl
from jax.experimental.pallas import tpu as pltpu


# ----------------------------- config (small, synthetic) -----------------------------
HIDDEN_SIZE = 64
NUM_HEADS = 2
Q_LORA_RANK = 32
KV_LORA_RANK = 32
QK_ROPE_HEAD_DIM = 16
QK_NOPE_HEAD_DIM = 32
V_HEAD_DIM = 32
Q_HEAD_DIM = QK_NOPE_HEAD_DIM + QK_ROPE_HEAD_DIM          # 48
ROPE_THETA = 10000.0
RMS_EPS = 1e-6
# rope_scaling = None  -> softmax_scale = q_head_dim ** -0.5
SOFTMAX_SCALE = Q_HEAD_DIM ** (-0.5)
# attention_dropout = 0.0 (eval mode) -> dropout is identity
# attention_bias = False -> no biases on the linear layers

_R = QK_ROPE_HEAD_DIM
_HALF = _R // 2
# per-head column layout of the prepped q_b weights: [nope | rope | rotate_half(rope)]
_QB_HEAD_DIM = QK_NOPE_HEAD_DIM + 2 * _R                   # 64
_KVB_HEAD_DIM = QK_NOPE_HEAD_DIM + V_HEAD_DIM              # 64
# fused a-projection column layout: [q_lora | kv_lora | k_pe | rotate_half(k_pe)]
_A_COLS = Q_LORA_RANK + KV_LORA_RANK + 2 * _R              # 96


# ----------------------------- fused forward kernel -----------------------------
def _fused_attn_kernel(
    x_ref,      # (B*S, hidden)                       f32 activations
    wa_ref,     # (hidden, _A_COLS)                   bf16 fused q_a + kv_a(+rot)
    ln_ref,     # (1, QL + KVL)                       f32 packed [q_a_ln | kv_a_ln]
    wqb_ref,    # (QL, H * _QB_HEAD_DIM)              bf16 (rope de-interleaved + rot cols)
    wkvb_ref,   # (KVL, H * _KVB_HEAD_DIM)            bf16
    cs_ref,     # (B*S, 2R)                           f32 packed [cos | sin]
    wo_ref,     # (H * V_HEAD_DIM, hidden)            bf16
    o_ref,      # (B*S, hidden)
    *,
    scale,
    eps,
    batch,
    seq,
):
    f32 = jnp.float32
    bf16 = jnp.bfloat16
    contract_last = (((1,), (1,)), ((), ()))

    # ---- fused q_a / kv_a / k_pe(+rot) projection: one GEMM over hidden ----
    x = x_ref[...].astype(bf16)                                 # single cast, no f32 copy
    a = jnp.dot(x, wa_ref[...], preferred_element_type=f32)     # (BS, 96)

    q_a = a[:, :Q_LORA_RANK]
    c_kv = a[:, Q_LORA_RANK:Q_LORA_RANK + KV_LORA_RANK]
    k_pe = a[:, Q_LORA_RANK + KV_LORA_RANK:
             Q_LORA_RANK + KV_LORA_RANK + _R]                   # de-interleaved
    k_pe_rot = a[:, Q_LORA_RANK + KV_LORA_RANK + _R:]           # rotate_half(k_pe)

    # ---- RMSNorm (f32 internals, matches DeepseekV3RMSNorm) ----
    ln = ln_ref[...]
    def rmsnorm(v, w):
        var = jnp.mean(v * v, axis=-1, keepdims=True)
        return w * (v * jax.lax.rsqrt(var + eps))

    q_a = rmsnorm(q_a, ln[:, :Q_LORA_RANK])
    c_kv = rmsnorm(c_kv, ln[:, Q_LORA_RANK:])

    # ---- q_b / kv_b projections (all heads + all tokens in one GEMM each) ----
    q = jnp.dot(q_a.astype(bf16), wqb_ref[...],
                preferred_element_type=f32)                     # (BS, H*64)
    kv = jnp.dot(c_kv.astype(bf16), wkvb_ref[...],
                 preferred_element_type=f32)                    # (BS, H*64)

    # ---- RoPE: purely elementwise (rotate_half already folded into weights) ----
    cs = cs_ref[...]
    cos = cs[:, :_R]
    sin = cs[:, _R:]
    k_pe_e = (k_pe * cos + k_pe_rot * sin).astype(bf16)         # shared per head (MQA)

    # ---- causal mask generated in-kernel (no HBM mask input) ----
    row = jax.lax.broadcasted_iota(jnp.int32, (seq, seq), 0)
    col = jax.lax.broadcasted_iota(jnp.int32, (seq, seq), 1)
    causal_ok = col <= row
    neg = jnp.finfo(f32).min

    wo = wo_ref[...]                                            # (H*Dv, hidden) bf16

    attn_rows = []
    for b in range(batch):                                      # static unroll, B=2
        sl = slice(b * seq, (b + 1) * seq)
        q_b = q[sl]
        kv_b = kv[sl]
        k_pe_b = k_pe_e[sl]
        cos_b = cos[sl]
        sin_b = sin[sl]

        head_outs = []
        for h in range(NUM_HEADS):                              # static unroll, H=2
            qh = q_b[:, h * _QB_HEAD_DIM:(h + 1) * _QB_HEAD_DIM]
            q_nope = qh[:, :QK_NOPE_HEAD_DIM].astype(bf16)
            q_pe = qh[:, QK_NOPE_HEAD_DIM:QK_NOPE_HEAD_DIM + _R]
            q_pe_rot = qh[:, QK_NOPE_HEAD_DIM + _R:]
            q_pe_e = (q_pe * cos_b + q_pe_rot * sin_b).astype(bf16)

            kvh = kv_b[:, h * _KVB_HEAD_DIM:(h + 1) * _KVB_HEAD_DIM]
            k_nope = kvh[:, :QK_NOPE_HEAD_DIM].astype(bf16)
            v_h = kvh[:, QK_NOPE_HEAD_DIM:].astype(bf16)

            # scores = [q_nope | q_pe] . [k_nope | k_pe]^T split into two dots
            # (contract on last dims; no K transpose relayout, no concat of K)
            scores = jax.lax.dot_general(q_nope, k_nope, contract_last,
                                         preferred_element_type=f32)
            scores = scores + jax.lax.dot_general(q_pe_e, k_pe_b, contract_last,
                                                  preferred_element_type=f32)
            scores = jnp.where(causal_ok, scores * scale, neg)

            # softmax in f32 (max-subtracted); reciprocal on the EUP slot.
            # NOTE: approx=True -> ~1e-3 rel. error in probabilities (perf choice).
            scores = scores - jnp.max(scores, axis=-1, keepdims=True)
            p = jnp.exp(scores)
            p = p * pl.reciprocal(jnp.sum(p, axis=-1, keepdims=True), approx=True)

            head_outs.append(jnp.dot(p.astype(bf16), v_h,
                                     preferred_element_type=f32))   # (S, Dv)

        attn_rows.append(jnp.concatenate(head_outs, axis=-1))       # (S, H*Dv)

    # one o_proj GEMM over all batches/heads, one full-block store
    attn = jnp.concatenate(attn_rows, axis=0).astype(bf16)          # (BS, H*Dv)
    o_ref[...] = jnp.dot(attn, wo, preferred_element_type=f32).astype(o_ref.dtype)


# ----------------------------- one-time weight prep -----------------------------
def prepare_params(params):
    """Transpose, fuse, fold RoPE de-interleave + rotate_half into weights, cast to bf16."""
    bf16 = jnp.bfloat16
    perm = jnp.concatenate([jnp.arange(0, _R, 2), jnp.arange(1, _R, 2)])  # HF de-interleave

    def add_rot(cols):
        # columns that produce rotate_half(de-interleaved rope features)
        return jnp.concatenate([-cols[..., _HALF:], cols[..., :_HALF]], axis=-1)

    # fused a-projection: (hidden, QL + KVL + R + R)
    w_a = jnp.concatenate(
        [params["q_a_proj_w"], params["kv_a_proj_with_mqa_w"]], axis=0).T
    n_a = Q_LORA_RANK + KV_LORA_RANK
    rope_cols = w_a[:, n_a:][:, perm]
    w_a = jnp.concatenate([w_a[:, :n_a], rope_cols, add_rot(rope_cols)],
                          axis=1).astype(bf16)

    # q_b projection: per head [nope | rope(de-interleaved) | rotate_half(rope)]
    w_qb = params["q_b_proj_w"].T.reshape(Q_LORA_RANK, NUM_HEADS, Q_HEAD_DIM)
    qb_rope = w_qb[..., QK_NOPE_HEAD_DIM:][..., perm]
    w_qb = jnp.concatenate([w_qb[..., :QK_NOPE_HEAD_DIM], qb_rope, add_rot(qb_rope)],
                           axis=-1).reshape(Q_LORA_RANK,
                                            NUM_HEADS * _QB_HEAD_DIM).astype(bf16)

    ln = jnp.concatenate([params["q_a_layernorm_w"],
                          params["kv_a_layernorm_w"]]).reshape(1, -1).astype(jnp.float32)

    return {
        "w_a": w_a,
        "ln": ln,
        "w_qb": w_qb,
        "w_kvb": params["kv_b_proj_w"].T.astype(bf16),
        "w_o": params["o_proj_w"].T.astype(bf16),
    }


# ----------------------------- wrapper -----------------------------
@jax.jit
def deepseek_v3_attention_forward(prepped, hidden_states, cos, sin):
    B, S, H = hidden_states.shape
    BS = B * S
    x2d = hidden_states.reshape(BS, H)
    cs = jnp.concatenate([cos, sin], axis=-1).reshape(BS, 2 * _R).astype(jnp.float32)

    out2d = pl.pallas_call(
        partial(_fused_attn_kernel, scale=SOFTMAX_SCALE, eps=RMS_EPS, batch=B, seq=S),
        out_shape=jax.ShapeDtypeStruct((BS, HIDDEN_SIZE), hidden_states.dtype),
        grid=(1,),
        in_specs=[
            pl.BlockSpec((BS, HIDDEN_SIZE), lambda i: (0, 0)),                       # x
            pl.BlockSpec((HIDDEN_SIZE, _A_COLS), lambda i: (0, 0)),                  # w_a
            pl.BlockSpec((1, Q_LORA_RANK + KV_LORA_RANK), lambda i: (0, 0)),         # ln
            pl.BlockSpec((Q_LORA_RANK, NUM_HEADS * _QB_HEAD_DIM), lambda i: (0, 0)),  # w_qb
            pl.BlockSpec((KV_LORA_RANK, NUM_HEADS * _KVB_HEAD_DIM), lambda i: (0, 0)),  # w_kvb
            pl.BlockSpec((BS, 2 * _R), lambda i: (0, 0)),                            # cos|sin
            pl.BlockSpec((NUM_HEADS * V_HEAD_DIM, HIDDEN_SIZE), lambda i: (0, 0)),   # w_o
        ],
        out_specs=pl.BlockSpec((BS, HIDDEN_SIZE), lambda i: (0, 0)),
        compiler_params=pltpu.CompilerParams(dimension_semantics=("arbitrary",)),
    )(x2d, prepped["w_a"], prepped["ln"], prepped["w_qb"], prepped["w_kvb"],
      cs, prepped["w_o"])

    return out2d.reshape(B, S, HIDDEN_SIZE)


# ----------------------------- rotary table (module input: position_embeddings) -----------------------------
def make_rotary(position_ids, dim, theta, dtype):
    # position_ids: (B, S) -> cos/sin (B, S, dim), matching DeepseekV3RotaryEmbedding
    inv_freq = 1.0 / (theta ** (jnp.arange(0, dim, 2, dtype=jnp.float32) / dim))
    freqs = position_ids[..., None].astype(jnp.float32) * inv_freq[None, None, :]
    emb = jnp.concatenate([freqs, freqs], axis=-1)
    return jnp.cos(emb).astype(dtype), jnp.sin(emb).astype(dtype)


# ----------------------------- deterministic parameter init -----------------------------
def init_params(key):
    ks = jax.random.split(key, 5)
    scale = 0.02

    def lin(k, out_dim, in_dim):
        return jax.random.normal(k, (out_dim, in_dim), dtype=jnp.float32) * scale

    return {
        "q_a_proj_w": lin(ks[0], Q_LORA_RANK, HIDDEN_SIZE),
        "q_a_layernorm_w": jnp.ones((Q_LORA_RANK,), dtype=jnp.float32),
        "q_b_proj_w": lin(ks[1], NUM_HEADS * Q_HEAD_DIM, Q_LORA_RANK),
        "kv_a_proj_with_mqa_w": lin(ks[2], KV_LORA_RANK + QK_ROPE_HEAD_DIM, HIDDEN_SIZE),
        "kv_a_layernorm_w": jnp.ones((KV_LORA_RANK,), dtype=jnp.float32),
        "kv_b_proj_w": lin(ks[3], NUM_HEADS * (QK_NOPE_HEAD_DIM + V_HEAD_DIM), KV_LORA_RANK),
        "o_proj_w": lin(ks[4], HIDDEN_SIZE, NUM_HEADS * V_HEAD_DIM),
    }


if __name__ == "__main__":
    B, S = 2, 8
    key = jax.random.PRNGKey(0)
    k_param, k_x = jax.random.split(key)

    params = init_params(k_param)
    prepped = prepare_params(params)

    hidden_states = jax.random.normal(k_x, (B, S, HIDDEN_SIZE), dtype=jnp.float32)
    position_ids = jnp.broadcast_to(jnp.arange(S, dtype=jnp.int32)[None, :], (B, S))
    cos, sin = make_rotary(position_ids, QK_ROPE_HEAD_DIM, ROPE_THETA, jnp.float32)

    # causal additive mask is generated inside the kernel (eval path, is_causal=True)
    out = deepseek_v3_attention_forward(prepped, hidden_states, cos, sin)
    out = jax.block_until_ready(out)

    assert out.shape == (B, S, HIDDEN_SIZE)
    assert bool(jnp.all(jnp.isfinite(out)))
    print("KERNEL_OK")
</pallas_src>

<mosaic_0001>
module attributes {stable_mosaic.version = 11 : i64} {
  func.func @_fused_attn_kernel(%arg0: i32, %arg1: memref<16x64xf32, #tpu.memory_space<vmem>>, %arg2: memref<64x96xbf16, #tpu.memory_space<vmem>>, %arg3: memref<1x64xf32, #tpu.memory_space<vmem>>, %arg4: memref<32x128xbf16, #tpu.memory_space<vmem>>, %arg5: memref<32x128xbf16, #tpu.memory_space<vmem>>, %arg6: memref<16x32xf32, #tpu.memory_space<vmem>>, %arg7: memref<64x64xbf16, #tpu.memory_space<vmem>>, %arg8: memref<16x64xf32, #tpu.memory_space<vmem>>) attributes {dimension_semantics = [#tpu.dimension_semantics<arbitrary>], iteration_bounds = array<i64: 1>, scalar_prefetch = 0 : i64, scratch_operands = 0 : i64, tpu.core_type = #tpu.core_type<tc>, window_params = [{pipeline_mode = #tpu.pipeline_mode<synchronous>, transform_indices = @transform_0, window_bounds = array<i64: 16, 64>}, {pipeline_mode = #tpu.pipeline_mode<synchronous>, transform_indices = @transform_1, window_bounds = array<i64: 64, 96>}, {pipeline_mode = #tpu.pipeline_mode<synchronous>, transform_indices = @transform_2, window_bounds = array<i64: 1, 64>}, {pipeline_mode = #tpu.pipeline_mode<synchronous>, transform_indices = @transform_3, window_bounds = array<i64: 32, 128>}, {pipeline_mode = #tpu.pipeline_mode<synchronous>, transform_indices = @transform_4, window_bounds = array<i64: 32, 128>}, {pipeline_mode = #tpu.pipeline_mode<synchronous>, transform_indices = @transform_5, window_bounds = array<i64: 16, 32>}, {pipeline_mode = #tpu.pipeline_mode<synchronous>, transform_indices = @transform_6, window_bounds = array<i64: 64, 64>}, {pipeline_mode = #tpu.pipeline_mode<synchronous>, transform_indices = @transform_7, window_bounds = array<i64: 16, 64>}]} {
    %c0 = arith.constant 0 : index
    %c0_0 = arith.constant 0 : index
    %0 = vector.load %arg1[%c0, %c0_0] : memref<16x64xf32, #tpu.memory_space<vmem>>, vector<16x64xf32>
    %1 = arith.truncf %0 : vector<16x64xf32> to vector<16x64xbf16>
    %c0_1 = arith.constant 0 : index
    %c0_2 = arith.constant 0 : index
    %2 = vector.load %arg2[%c0_1, %c0_2] : memref<64x96xbf16, #tpu.memory_space<vmem>>, vector<64x96xbf16>
    %cst = arith.constant dense<0.000000e+00> : vector<16x96xf32>
    %3 = tpu.matmul %1, %2, %cst {dimension_numbers = #tpu.dot_dimension_numbers<[1], [0], [0], [1], [0, 0, 1, 1], [], []>} : vector<16x64xbf16>, vector<64x96xbf16>, vector<16x96xf32> -> vector<16x96xf32>
    %4 = vector.extract_strided_slice %3 {offsets = [0, 0], sizes = [16, 32], strides = [1, 1]} : vector<16x96xf32> to vector<16x32xf32>
    %5 = vector.extract_strided_slice %3 {offsets = [0, 32], sizes = [16, 32], strides = [1, 1]} : vector<16x96xf32> to vector<16x32xf32>
    %6 = vector.extract_strided_slice %3 {offsets = [0, 64], sizes = [16, 16], strides = [1, 1]} : vector<16x96xf32> to vector<16x16xf32>
    %7 = vector.extract_strided_slice %3 {offsets = [0, 80], sizes = [16, 16], strides = [1, 1]} : vector<16x96xf32> to vector<16x16xf32>
    %c0_3 = arith.constant 0 : index
    %c0_4 = arith.constant 0 : index
    %8 = vector.load %arg3[%c0_3, %c0_4] : memref<1x64xf32, #tpu.memory_space<vmem>>, vector<1x64xf32>
    %9 = vector.extract_strided_slice %8 {offsets = [0, 0], sizes = [1, 32], strides = [1, 1]} : vector<1x64xf32> to vector<1x32xf32>
    %10 = arith.mulf %4, %4 : vector<16x32xf32>
    %cst_5 = arith.constant dense<0.000000e+00> : vector<16xf32>
    %11 = vector.multi_reduction <add>, %10, %cst_5 [1] : vector<16x32xf32> to vector<16xf32>
    %12 = vector.shape_cast %11 : vector<16xf32> to vector<16x1xf32>
    %cst_6 = arith.constant 3.200000e+01 : f32
    %13 = vector.broadcast %cst_6 : f32 to vector<16x1xf32>
    %14 = arith.divf %12, %13 : vector<16x1xf32>
    %cst_7 = arith.constant 9.99999997E-7 : f32
    %15 = vector.broadcast %cst_7 : f32 to vector<16x1xf32>
    %16 = arith.addf %14, %15 : vector<16x1xf32>
    %17 = math.rsqrt %16 : vector<16x1xf32>
    %18 = vector.broadcast %17 : vector<16x1xf32> to vector<16x32xf32>
    %19 = arith.mulf %4, %18 : vector<16x32xf32>
    %20 = vector.broadcast %9 : vector<1x32xf32> to vector<16x32xf32>
    %21 = arith.mulf %20, %19 : vector<16x32xf32>
    %22 = vector.extract_strided_slice %8 {offsets = [0, 32], sizes = [1, 32], strides = [1, 1]} : vector<1x64xf32> to vector<1x32xf32>
    %23 = arith.mulf %5, %5 : vector<16x32xf32>
    %cst_8 = arith.constant dense<0.000000e+00> : vector<16xf32>
    %24 = vector.multi_reduction <add>, %23, %cst_8 [1] : vector<16x32xf32> to vector<16xf32>
    %25 = vector.shape_cast %24 : vector<16xf32> to vector<16x1xf32>
    %cst_9 = arith.constant 3.200000e+01 : f32
    %26 = vector.broadcast %cst_9 : f32 to vector<16x1xf32>
    %27 = arith.divf %25, %26 : vector<16x1xf32>
    %cst_10 = arith.constant 9.99999997E-7 : f32
    %28 = vector.broadcast %cst_10 : f32 to vector<16x1xf32>
    %29 = arith.addf %27, %28 : vector<16x1xf32>
    %30 = math.rsqrt %29 : vector<16x1xf32>
    %31 = vector.broadcast %30 : vector<16x1xf32> to vector<16x32xf32>
    %32 = arith.mulf %5, %31 : vector<16x32xf32>
    %33 = vector.broadcast %22 : vector<1x32xf32> to vector<16x32xf32>
    %34 = arith.mulf %33, %32 : vector<16x32xf32>
    %35 = arith.truncf %21 : vector<16x32xf32> to vector<16x32xbf16>
    %c0_11 = arith.constant 0 : index
    %c0_12 = arith.constant 0 : index
    %36 = vector.load %arg4[%c0_11, %c0_12] : memref<32x128xbf16, #tpu.memory_space<vmem>>, vector<32x128xbf16>
    %cst_13 = arith.constant dense<0.000000e+00> : vector<16x128xf32>
    %37 = tpu.matmul %35, %36, %cst_13 {dimension_numbers = #tpu.dot_dimension_numbers<[1], [0], [0], [1], [0, 0, 1, 1], [], []>} : vector<16x32xbf16>, vector<32x128xbf16>, vector<16x128xf32> -> vector<16x128xf32>
    %38 = arith.truncf %34 : vector<16x32xf32> to vector<16x32xbf16>
    %c0_14 = arith.constant 0 : index
    %c0_15 = arith.constant 0 : index
    %39 = vector.load %arg5[%c0_14, %c0_15] : memref<32x128xbf16, #tpu.memory_space<vmem>>, vector<32x128xbf16>
    %cst_16 = arith.constant dense<0.000000e+00> : vector<16x128xf32>
    %40 = tpu.matmul %38, %39, %cst_16 {dimension_numbers = #tpu.dot_dimension_numbers<[1], [0], [0], [1], [0, 0, 1, 1], [], []>} : vector<16x32xbf16>, vector<32x128xbf16>, vector<16x128xf32> -> vector<16x128xf32>
    %c0_17 = arith.constant 0 : index
    %c0_18 = arith.constant 0 : index
    %41 = vector.load %arg6[%c0_17, %c0_18] : memref<16x32xf32, #tpu.memory_space<vmem>>, vector<16x32xf32>
    %42 = vector.extract_strided_slice %41 {offsets = [0, 0], sizes = [16, 16], strides = [1, 1]} : vector<16x32xf32> to vector<16x16xf32>
    %43 = vector.extract_strided_slice %41 {offsets = [0, 16], sizes = [16, 16], strides = [1, 1]} : vector<16x32xf32> to vector<16x16xf32>
    %44 = arith.mulf %6, %42 : vector<16x16xf32>
    %45 = arith.mulf %7, %43 : vector<16x16xf32>
    %46 = arith.addf %44, %45 : vector<16x16xf32>
    %47 = arith.truncf %46 : vector<16x16xf32> to vector<16x16xbf16>
    %48 = tpu.iota {dimensions = array<i32: 0>} : vector<8x8xi32>
    %49 = tpu.iota {dimensions = array<i32: 1>} : vector<8x8xi32>
    %50 = arith.cmpi sle, %49, %48 : vector<8x8xi32>
    %c0_19 = arith.constant 0 : index
    %c0_20 = arith.constant 0 : index
    %51 = vector.load %arg7[%c0_19, %c0_20] : memref<64x64xbf16, #tpu.memory_space<vmem>>, vector<64x64xbf16>
    %52 = vector.extract_strided_slice %37 {offsets = [0, 0], sizes = [8, 128], strides = [1, 1]} : vector<16x128xf32> to vector<8x128xf32>
    %53 = vector.extract_strided_slice %40 {offsets = [0, 0], sizes = [8, 128], strides = [1, 1]} : vector<16x128xf32> to vector<8x128xf32>
    %54 = vector.extract_strided_slice %47 {offsets = [0, 0], sizes = [8, 16], strides = [1, 1]} : vector<16x16xbf16> to vector<8x16xbf16>
    %55 = vector.extract_strided_slice %42 {offsets = [0, 0], sizes = [8, 16], strides = [1, 1]} : vector<16x16xf32> to vector<8x16xf32>
    %56 = vector.extract_strided_slice %43 {offsets = [0, 0], sizes = [8, 16], strides = [1, 1]} : vector<16x16xf32> to vector<8x16xf32>
    %57 = vector.extract_strided_slice %52 {offsets = [0, 0], sizes = [8, 64], strides = [1, 1]} : vector<8x128xf32> to vector<8x64xf32>
    %58 = vector.extract_strided_slice %57 {offsets = [0, 0], sizes = [8, 32], strides = [1, 1]} : vector<8x64xf32> to vector<8x32xf32>
    %59 = arith.truncf %58 : vector<8x32xf32> to vector<8x32xbf16>
    %60 = vector.extract_strided_slice %57 {offsets = [0, 32], sizes = [8, 16], strides = [1, 1]} : vector<8x64xf32> to vector<8x16xf32>
    %61 = vector.extract_strided_slice %57 {offsets = [0, 48], sizes = [8, 16], strides = [1, 1]} : vector<8x64xf32> to vector<8x16xf32>
    %62 = arith.mulf %60, %55 : vector<8x16xf32>
    %63 = arith.mulf %61, %56 : vector<8x16xf32>
    %64 = arith.addf %62, %63 : vector<8x16xf32>
    %65 = arith.truncf %64 : vector<8x16xf32> to vector<8x16xbf16>
    %66 = vector.extract_strided_slice %53 {offsets = [0, 0], sizes = [8, 64], strides = [1, 1]} : vector<8x128xf32> to vector<8x64xf32>
    %67 = vector.extract_strided_slice %66 {offsets = [0, 0], sizes = [8, 32], strides = [1, 1]} : vector<8x64xf32> to vector<8x32xf32>
    %68 = arith.truncf %67 : vector<8x32xf32> to vector<8x32xbf16>
    %69 = vector.extract_strided_slice %66 {offsets = [0, 32], sizes = [8, 32], strides = [1, 1]} : vector<8x64xf32> to vector<8x32xf32>
    %70 = arith.truncf %69 : vector<8x32xf32> to vector<8x32xbf16>
    %cst_21 = arith.constant dense<0.000000e+00> : vector<8x8xf32>
    %71 = tpu.matmul %59, %68, %cst_21 {dimension_numbers = #tpu.dot_dimension_numbers<[1], [1], [0], [0], [0, 0, 1, 0], [], []>} : vector<8x32xbf16>, vector<8x32xbf16>, vector<8x8xf32> -> vector<8x8xf32>
    %cst_22 = arith.constant dense<0.000000e+00> : vector<8x8xf32>
    %72 = tpu.matmul %65, %54, %cst_22 {dimension_numbers = #tpu.dot_dimension_numbers<[1], [1], [0], [0], [0, 0, 1, 0], [], []>} : vector<8x16xbf16>, vector<8x16xbf16>, vector<8x8xf32> -> vector<8x8xf32>
    %73 = arith.addf %71, %72 : vector<8x8xf32>
    %cst_23 = arith.constant 0.144337565 : f32
    %74 = vector.broadcast %cst_23 : f32 to vector<8x8xf32>
    %75 = arith.mulf %73, %74 : vector<8x8xf32>
    %cst_24 = arith.constant -3.40282347E+38 : f32
    %76 = vector.broadcast %cst_24 : f32 to vector<8x8xf32>
    %77 = arith.select %50, %75, %76 : vector<8x8xi1>, vector<8x8xf32>
    %cst_25 = arith.constant dense<0xFF800000> : vector<8xf32>
    %78 = vector.multi_reduction <maximumf>, %77, %cst_25 [1] : vector<8x8xf32> to vector<8xf32>
    %79 = vector.shape_cast %78 : vector<8xf32> to vector<8x1xf32>
    %80 = vector.broadcast %79 : vector<8x1xf32> to vector<8x8xf32>
    %81 = arith.subf %77, %80 : vector<8x8xf32>
    %82 = math.exp %81 : vector<8x8xf32>
    %cst_26 = arith.constant dense<0.000000e+00> : vector<8xf32>
    %83 = vector.multi_reduction <add>, %82, %cst_26 [1] : vector<8x8xf32> to vector<8xf32>
    %84 = vector.shape_cast %83 : vector<8xf32> to vector<8x1xf32>
    %85 = tpu.reciprocal %84 {approx = true} : vector<8x1xf32> -> vector<8x1xf32>
    %86 = vector.broadcast %85 : vector<8x1xf32> to vector<8x8xf32>
    %87 = arith.mulf %82, %86 : vector<8x8xf32>
    %88 = arith.truncf %87 : vector<8x8xf32> to vector<8x8xbf16>
    %cst_27 = arith.constant dense<0.000000e+00> : vector<8x32xf32>
    %89 = tpu.matmul %88, %70, %cst_27 {dimension_numbers = #tpu.dot_dimension_numbers<[1], [0], [0], [1], [0, 0, 1, 1], [], []>} : vector<8x8xbf16>, vector<8x32xbf16>, vector<8x32xf32> -> vector<8x32xf32>
    %90 = vector.extract_strided_slice %52 {offsets = [0, 64], sizes = [8, 64], strides = [1, 1]} : vector<8x128xf32> to vector<8x64xf32>
    %91 = vector.extract_strided_slice %90 {offsets = [0, 0], sizes = [8, 32], strides = [1, 1]} : vector<8x64xf32> to vector<8x32xf32>
    %92 = arith.truncf %91 : vector<8x32xf32> to vector<8x32xbf16>
    %93 = vector.extract_strided_slice %90 {offsets = [0, 32], sizes = [8, 16], strides = [1, 1]} : vector<8x64xf32> to vector<8x16xf32>
    %94 = vector.extract_strided_slice %90 {offsets = [0, 48], sizes = [8, 16], strides = [1, 1]} : vector<8x64xf32> to vector<8x16xf32>
    %95 = arith.mulf %93, %55 : vector<8x16xf32>
    %96 = arith.mulf %94, %56 : vector<8x16xf32>
    %97 = arith.addf %95, %96 : vector<8x16xf32>
    %98 = arith.truncf %97 : vector<8x16xf32> to vector<8x16xbf16>
    %99 = vector.extract_strided_slice %53 {offsets = [0, 64], sizes = [8, 64], strides = [1, 1]} : vector<8x128xf32> to vector<8x64xf32>
    %100 = vector.extract_strided_slice %99 {offsets = [0, 0], sizes = [8, 32], strides = [1, 1]} : vector<8x64xf32> to vector<8x32xf32>
    %101 = arith.truncf %100 : vector<8x32xf32> to vector<8x32xbf16>
    %102 = vector.extract_strided_slice %99 {offsets = [0, 32], sizes = [8, 32], strides = [1, 1]} : vector<8x64xf32> to vector<8x32xf32>
    %103 = arith.truncf %102 : vector<8x32xf32> to vector<8x32xbf16>
    %cst_28 = arith.constant dense<0.000000e+00> : vector<8x8xf32>
    %104 = tpu.matmul %92, %101, %cst_28 {dimension_numbers = #tpu.dot_dimension_numbers<[1], [1], [0], [0], [0, 0, 1, 0], [], []>} : vector<8x32xbf16>, vector<8x32xbf16>, vector<8x8xf32> -> vector<8x8xf32>
    %cst_29 = arith.constant dense<0.000000e+00> : vector<8x8xf32>
    %105 = tpu.matmul %98, %54, %cst_29 {dimension_numbers = #tpu.dot_dimension_numbers<[1], [1], [0], [0], [0, 0, 1, 0], [], []>} : vector<8x16xbf16>, vector<8x16xbf16>, vector<8x8xf32> -> vector<8x8xf32>
    %106 = arith.addf %104, %105 : vector<8x8xf32>
    %cst_30 = arith.constant 0.144337565 : f32
    %107 = vector.broadcast %cst_30 : f32 to vector<8x8xf32>
    %108 = arith.mulf %106, %107 : vector<8x8xf32>
    %cst_31 = arith.constant -3.40282347E+38 : f32
    %109 = vector.broadcast %cst_31 : f32 to vector<8x8xf32>
    %110 = arith.select %50, %108, %109 : vector<8x8xi1>, vector<8x8xf32>
    %cst_32 = arith.constant dense<0xFF800000> : vector<8xf32>
    %111 = vector.multi_reduction <maximumf>, %110, %cst_32 [1] : vector<8x8xf32> to vector<8xf32>
    %112 = vector.shape_cast %111 : vector<8xf32> to vector<8x1xf32>
    %113 = vector.broadcast %112 : vector<8x1xf32> to vector<8x8xf32>
    %114 = arith.subf %110, %113 : vector<8x8xf32>
    %115 = math.exp %114 : vector<8x8xf32>
    %cst_33 = arith.constant dense<0.000000e+00> : vector<8xf32>
    %116 = vector.multi_reduction <add>, %115, %cst_33 [1] : vector<8x8xf32> to vector<8xf32>
    %117 = vector.shape_cast %116 : vector<8xf32> to vector<8x1xf32>
    %118 = tpu.reciprocal %117 {approx = true} : vector<8x1xf32> -> vector<8x1xf32>
    %119 = vector.broadcast %118 : vector<8x1xf32> to vector<8x8xf32>
    %120 = arith.mulf %115, %119 : vector<8x8xf32>
    %121 = arith.truncf %120 : vector<8x8xf32> to vector<8x8xbf16>
    %cst_34 = arith.constant dense<0.000000e+00> : vector<8x32xf32>
    %122 = tpu.matmul %121, %103, %cst_34 {dimension_numbers = #tpu.dot_dimension_numbers<[1], [0], [0], [1], [0, 0, 1, 1], [], []>} : vector<8x8xbf16>, vector<8x32xbf16>, vector<8x32xf32> -> vector<8x32xf32>
    %123 = tpu.concatenate %89, %122 in 1 : vector<8x32xf32>, vector<8x32xf32> -> vector<8x64xf32>
    %124 = vector.extract_strided_slice %37 {offsets = [8, 0], sizes = [8, 128], strides = [1, 1]} : vector<16x128xf32> to vector<8x128xf32>
    %125 = vector.extract_strided_slice %40 {offsets = [8, 0], sizes = [8, 128], strides = [1, 1]} : vector<16x128xf32> to vector<8x128xf32>
    %126 = vector.extract_strided_slice %47 {offsets = [8, 0], sizes = [8, 16], strides = [1, 1]} : vector<16x16xbf16> to vector<8x16xbf16>
    %127 = vector.extract_strided_slice %42 {offsets = [8, 0], sizes = [8, 16], strides = [1, 1]} : vector<16x16xf32> to vector<8x16xf32>
    %128 = vector.extract_strided_slice %43 {offsets = [8, 0], sizes = [8, 16], strides = [1, 1]} : vector<16x16xf32> to vector<8x16xf32>
    %129 = vector.extract_strided_slice %124 {offsets = [0, 0], sizes = [8, 64], strides = [1, 1]} : vector<8x128xf32> to vector<8x64xf32>
    %130 = vector.extract_strided_slice %129 {offsets = [0, 0], sizes = [8, 32], strides = [1, 1]} : vector<8x64xf32> to vector<8x32xf32>
    %131 = arith.truncf %130 : vector<8x32xf32> to vector<8x32xbf16>
    %132 = vector.extract_strided_slice %129 {offsets = [0, 32], sizes = [8, 16], strides = [1, 1]} : vector<8x64xf32> to vector<8x16xf32>
    %133 = vector.extract_strided_slice %129 {offsets = [0, 48], sizes = [8, 16], strides = [1, 1]} : vector<8x64xf32> to vector<8x16xf32>
    %134 = arith.mulf %132, %127 : vector<8x16xf32>
    %135 = arith.mulf %133, %128 : vector<8x16xf32>
    %136 = arith.addf %134, %135 : vector<8x16xf32>
    %137 = arith.truncf %136 : vector<8x16xf32> to vector<8x16xbf16>
    %138 = vector.extract_strided_slice %125 {offsets = [0, 0], sizes = [8, 64], strides = [1, 1]} : vector<8x128xf32> to vector<8x64xf32>
    %139 = vector.extract_strided_slice %138 {offsets = [0, 0], sizes = [8, 32], strides = [1, 1]} : vector<8x64xf32> to vector<8x32xf32>
    %140 = arith.truncf %139 : vector<8x32xf32> to vector<8x32xbf16>
    %141 = vector.extract_strided_slice %138 {offsets = [0, 32], sizes = [8, 32], strides = [1, 1]} : vector<8x64xf32> to vector<8x32xf32>
    %142 = arith.truncf %141 : vector<8x32xf32> to vector<8x32xbf16>
    %cst_35 = arith.constant dense<0.000000e+00> : vector<8x8xf32>
    %143 = tpu.matmul %131, %140, %cst_35 {dimension_numbers = #tpu.dot_dimension_numbers<[1], [1], [0], [0], [0, 0, 1, 0], [], []>} : vector<8x32xbf16>, vector<8x32xbf16>, vector<8x8xf32> -> vector<8x8xf32>
    %cst_36 = arith.constant dense<0.000000e+00> : vector<8x8xf32>
    %144 = tpu.matmul %137, %126, %cst_36 {dimension_numbers = #tpu.dot_dimension_numbers<[1], [1], [0], [0], [0, 0, 1, 0], [], []>} : vector<8x16xbf16>, vector<8x16xbf16>, vector<8x8xf32> -> vector<8x8xf32>
    %145 = arith.addf %143, %144 : vector<8x8xf32>
    %cst_37 = arith.constant 0.144337565 : f32
    %146 = vector.broadcast %cst_37 : f32 to vector<8x8xf32>
    %147 = arith.mulf %145, %146 : vector<8x8xf32>
    %cst_38 = arith.constant -3.40282347E+38 : f32
    %148 = vector.broadcast %cst_38 : f32 to vector<8x8xf32>
    %149 = arith.select %50, %147, %148 : vector<8x8xi1>, vector<8x8xf32>
    %cst_39 = arith.constant dense<0xFF800000> : vector<8xf32>
    %150 = vector.multi_reduction <maximumf>, %149, %cst_39 [1] : vector<8x8xf32> to vector<8xf32>
    %151 = vector.shape_cast %150 : vector<8xf32> to vector<8x1xf32>
    %152 = vector.broadcast %151 : vector<8x1xf32> to vector<8x8xf32>
    %153 = arith.subf %149, %152 : vector<8x8xf32>
    %154 = math.exp %153 : vector<8x8xf32>
    %cst_40 = arith.constant dense<0.000000e+00> : vector<8xf32>
    %155 = vector.multi_reduction <add>, %154, %cst_40 [1] : vector<8x8xf32> to vector<8xf32>
    %156 = vector.shape_cast %155 : vector<8xf32> to vector<8x1xf32>
    %157 = tpu.reciprocal %156 {approx = true} : vector<8x1xf32> -> vector<8x1xf32>
    %158 = vector.broadcast %157 : vector<8x1xf32> to vector<8x8xf32>
    %159 = arith.mulf %154, %158 : vector<8x8xf32>
    %160 = arith.truncf %159 : vector<8x8xf32> to vector<8x8xbf16>
    %cst_41 = arith.constant dense<0.000000e+00> : vector<8x32xf32>
    %161 = tpu.matmul %160, %142, %cst_41 {dimension_numbers = #tpu.dot_dimension_numbers<[1], [0], [0], [1], [0, 0, 1, 1], [], []>} : vector<8x8xbf16>, vector<8x32xbf16>, vector<8x32xf32> -> vector<8x32xf32>
    %162 = vector.extract_strided_slice %124 {offsets = [0, 64], sizes = [8, 64], strides = [1, 1]} : vector<8x128xf32> to vector<8x64xf32>
    %163 = vector.extract_strided_slice %162 {offsets = [0, 0], sizes = [8, 32], strides = [1, 1]} : vector<8x64xf32> to vector<8x32xf32>
    %164 = arith.truncf %163 : vector<8x32xf32> to vector<8x32xbf16>
    %165 = vector.extract_strided_slice %162 {offsets = [0, 32], sizes = [8, 16], strides = [1, 1]} : vector<8x64xf32> to vector<8x16xf32>
    %166 = vector.extract_strided_slice %162 {offsets = [0, 48], sizes = [8, 16], strides = [1, 1]} : vector<8x64xf32> to vector<8x16xf32>
    %167 = arith.mulf %165, %127 : vector<8x16xf32>
    %168 = arith.mulf %166, %128 : vector<8x16xf32>
    %169 = arith.addf %167, %168 : vector<8x16xf32>
    %170 = arith.truncf %169 : vector<8x16xf32> to vector<8x16xbf16>
    %171 = vector.extract_strided_slice %125 {offsets = [0, 64], sizes = [8, 64], strides = [1, 1]} : vector<8x128xf32> to vector<8x64xf32>
    %172 = vector.extract_strided_slice %171 {offsets = [0, 0], sizes = [8, 32], strides = [1, 1]} : vector<8x64xf32> to vector<8x32xf32>
    %173 = arith.truncf %172 : vector<8x32xf32> to vector<8x32xbf16>
    %174 = vector.extract_strided_slice %171 {offsets = [0, 32], sizes = [8, 32], strides = [1, 1]} : vector<8x64xf32> to vector<8x32xf32>
    %175 = arith.truncf %174 : vector<8x32xf32> to vector<8x32xbf16>
    %cst_42 = arith.constant dense<0.000000e+00> : vector<8x8xf32>
    %176 = tpu.matmul %164, %173, %cst_42 {dimension_numbers = #tpu.dot_dimension_numbers<[1], [1], [0], [0], [0, 0, 1, 0], [], []>} : vector<8x32xbf16>, vector<8x32xbf16>, vector<8x8xf32> -> vector<8x8xf32>
    %cst_43 = arith.constant dense<0.000000e+00> : vector<8x8xf32>
    %177 = tpu.matmul %170, %126, %cst_43 {dimension_numbers = #tpu.dot_dimension_numbers<[1], [1], [0], [0], [0, 0, 1, 0], [], []>} : vector<8x16xbf16>, vector<8x16xbf16>, vector<8x8xf32> -> vector<8x8xf32>
    %178 = arith.addf %176, %177 : vector<8x8xf32>
    %cst_44 = arith.constant 0.144337565 : f32
    %179 = vector.broadcast %cst_44 : f32 to vector<8x8xf32>
    %180 = arith.mulf %178, %179 : vector<8x8xf32>
    %cst_45 = arith.constant -3.40282347E+38 : f32
    %181 = vector.broadcast %cst_45 : f32 to vector<8x8xf32>
    %182 = arith.select %50, %180, %181 : vector<8x8xi1>, vector<8x8xf32>
    %cst_46 = arith.constant dense<0xFF800000> : vector<8xf32>
    %183 = vector.multi_reduction <maximumf>, %182, %cst_46 [1] : vector<8x8xf32> to vector<8xf32>
    %184 = vector.shape_cast %183 : vector<8xf32> to vector<8x1xf32>
    %185 = vector.broadcast %184 : vector<8x1xf32> to vector<8x8xf32>
    %186 = arith.subf %182, %185 : vector<8x8xf32>
    %187 = math.exp %186 : vector<8x8xf32>
    %cst_47 = arith.constant dense<0.000000e+00> : vector<8xf32>
    %188 = vector.multi_reduction <add>, %187, %cst_47 [1] : vector<8x8xf32> to vector<8xf32>
    %189 = vector.shape_cast %188 : vector<8xf32> to vector<8x1xf32>
    %190 = tpu.reciprocal %189 {approx = true} : vector<8x1xf32> -> vector<8x1xf32>
    %191 = vector.broadcast %190 : vector<8x1xf32> to vector<8x8xf32>
    %192 = arith.mulf %187, %191 : vector<8x8xf32>
    %193 = arith.truncf %192 : vector<8x8xf32> to vector<8x8xbf16>
    %cst_48 = arith.constant dense<0.000000e+00> : vector<8x32xf32>
    %194 = tpu.matmul %193, %175, %cst_48 {dimension_numbers = #tpu.dot_dimension_numbers<[1], [0], [0], [1], [0, 0, 1, 1], [], []>} : vector<8x8xbf16>, vector<8x32xbf16>, vector<8x32xf32> -> vector<8x32xf32>
    %195 = tpu.concatenate %161, %194 in 1 : vector<8x32xf32>, vector<8x32xf32> -> vector<8x64xf32>
    %196 = tpu.concatenate %123, %195 in 0 : vector<8x64xf32>, vector<8x64xf32> -> vector<16x64xf32>
    %197 = arith.truncf %196 : vector<16x64xf32> to vector<16x64xbf16>
    %cst_49 = arith.constant dense<0.000000e+00> : vector<16x64xf32>
    %198 = tpu.matmul %197, %51, %cst_49 {dimension_numbers = #tpu.dot_dimension_numbers<[1], [0], [0], [1], [0, 0, 1, 1], [], []>} : vector<16x64xbf16>, vector<64x64xbf16>, vector<16x64xf32> -> vector<16x64xf32>
    %c0_50 = arith.constant 0 : index
    %c0_51 = arith.constant 0 : index
    %199 = vector.load %arg8[%c0_50, %c0_51] : memref<16x64xf32, #tpu.memory_space<vmem>>, vector<16x64xf32>
    tpu.vector_store %arg8[%c0_50, %c0_51], %198 {strides = array<i32>} : memref<16x64xf32, #tpu.memory_space<vmem>>, vector<16x64xf32>,
    return
  }
  func.func @transform_0(%arg0: i32) -> (i32, i32) {
    %c0_i32 = arith.constant 0 : i32
    %c0_i32_0 = arith.constant 0 : i32
    %c0_i32_1 = arith.constant 0 : i32
    return %c0_i32, %c0_i32_0 : i32, i32
  }
  func.func @transform_1(%arg0: i32) -> (i32, i32) {
    %c0_i32 = arith.constant 0 : i32
    %c0_i32_0 = arith.constant 0 : i32
    %c0_i32_1 = arith.constant 0 : i32
    return %c0_i32, %c0_i32_0 : i32, i32
  }
  func.func @transform_2(%arg0: i32) -> (i32, i32) {
    %c0_i32 = arith.constant 0 : i32
    %c0_i32_0 = arith.constant 0 : i32
    %c0_i32_1 = arith.constant 0 : i32
    return %c0_i32, %c0_i32_0 : i32, i32
  }
  func.func @transform_3(%arg0: i32) -> (i32, i32) {
    %c0_i32 = arith.constant 0 : i32
    %c0_i32_0 = arith.constant 0 : i32
    %c0_i32_1 = arith.constant 0 : i32
    return %c0_i32, %c0_i32_0 : i32, i32
  }
  func.func @transform_4(%arg0: i32) -> (i32, i32) {
    %c0_i32 = arith.constant 0 : i32
    %c0_i32_0 = arith.constant 0 : i32
    %c0_i32_1 = arith.constant 0 : i32
    return %c0_i32, %c0_i32_0 : i32, i32
  }
  func.func @transform_5(%arg0: i32) -> (i32, i32) {
    %c0_i32 = arith.constant 0 : i32
    %c0_i32_0 = arith.constant 0 : i32
    %c0_i32_1 = arith.constant 0 : i32
    return %c0_i32, %c0_i32_0 : i32, i32
  }
  func.func @transform_6(%arg0: i32) -> (i32, i32) {
    %c0_i32 = arith.constant 0 : i32
    %c0_i32_0 = arith.constant 0 : i32
    %c0_i32_1 = arith.constant 0 : i32
    return %c0_i32, %c0_i32_0 : i32, i32
  }
  func.func @transform_7(%arg0: i32) -> (i32, i32) {
    %c0_i32 = arith.constant 0 : i32
    %c0_i32_0 = arith.constant 0 : i32
    %c0_i32_1 = arith.constant 0 : i32
    return %c0_i32, %c0_i32_0 : i32, i32
  }
}

</mosaic_0001>

<bundles_post_ra>
// kernel: deepseek_v3_attention_forward.1
= control target key start
LH: loop header
LB: loop body
LE: loop exit
PB: predicated region body
PF: predicated region fallthrough
CT: control target
= control target key end

     0   :  { %12 = vsyncpa [#allocation3], 0  ;;  %s1763_s0 = inlined_call_operand.vmem [shape: f32[16,64], index: 0, kind: input, shape index: {}]   ;;  %s1764_s1 = inlined_call_operand.vmem [shape: bf16[64,96], index: 1, kind: input, shape index: {}]   ;;  %s1765_s2 = inlined_call_operand.vmem [shape: f32[1,64], index: 2, kind: input, shape index: {}]   ;;  %s1766_s3 = inlined_call_operand.hbm [shape: bf16[32,128], index: 3, kind: input, shape index: {}]   ;;  %s1767_s4 = inlined_call_operand.hbm [shape: bf16[32,128], index: 4, kind: input, shape index: {}]   ;;  %s1768_s5 = inlined_call_operand.vmem [shape: f32[16,32], index: 5, kind: input, shape index: {}]   ;;  %s1769_s6 = inlined_call_operand.hbm [shape: bf16[64,64], index: 6, kind: input, shape index: {}]   ;;  %s1770_s7 = inlined_call_operand.hbm [shape: f32[16,64], index: 7, kind: output, shape index: {}]  }
   0x1   :  { %13 = vsyncpa [#allocation6], 0 }
   0x2   :  { %14 = vsyncpa [#allocation4], 0  ;;  %s1468_s24 = smov [#allocation5]   ;;  %s1469_s26 = smov [#allocation2]  }
   0x3   :  { %s38_s25 = sshll.u32 %s1468_s24, 4  ;;  %s26_s27 = sshll.u32 %s1469_s26, 4  ;;  %s39_s25 = int_to_ptr.vmem [resolvable:$true] %s38_s25  ;;  %s27_s27 = int_to_ptr.vmem [resolvable:$true] %s26_s27 }
   0x4   :  { %s1390_s28 = scalar_lea.vmem %s39_s25, 256  ;;  %p1395_p1 = scmp.lt.s32.totalorder %s39_s25, %s39_s25 }
   0x5   :  { %p1391_p0 = scmp.ne.s32.totalorder %s39_s25, %s1390_s28  ;;  %p1396_p2 = scmp.lt.s32.totalorder %s1390_s28, %s1390_s28 }
   0x7   :  { %p1397_p3 = por %p1396_p2, %p1395_p1 }
   0x9   :  { %p1398_p4 = pnand %p1397_p3, %p1391_p0 }
   0xb   :  { %1401 = shalt.err (!%p1398_p4)
}
   0xc   :  { %s1470_s29 = smov 64   ;;  %s1471_s30 = smov 4  }
   0xd   :  { %44 = dma.hbm_to_vmem [thread:$0]  %s1767_s4, 256, %s39_s25, [#allocation6], %s1470_s29, %s1470_s29, %s1471_s30  }
   0xe   :  { %s1410_s10 = scalar_lea.vmem %s27_s27, 256  ;;  %p1415_p6 = scmp.lt.s32.totalorder %s27_s27, %s27_s27 }
   0xf   :  { %p1411_p5 = scmp.ne.s32.totalorder %s27_s27, %s1410_s10  ;;  %p1416_p7 = scmp.lt.s32.totalorder %s1410_s10, %s1410_s10 }
  0x11   :  { %p1417_p8 = por %p1416_p7, %p1415_p6 }
  0x13   :  { %p1418_p9 = pnand %p1417_p8, %p1411_p5 }
  0x15   :  { %1421 = shalt.err (!%p1418_p9)
}
  0x16   :  { %32 = dma.hbm_to_vmem [thread:$0]  %s1766_s3, 256, %s27_s27, [#allocation3], %s1470_s29, %s1470_s29, %s1471_s30  }
  0x17   :  { %s1472_s13 = smov [#allocation7]  }
  0x18   :  { %s52_s14 = sshll.u32 %s1472_s13, 4  ;;  %s53_s14 = int_to_ptr.vmem [resolvable:$true] %s52_s14 }
  0x19   :  { %s1430_s15 = scalar_lea.vmem %s53_s14, 512  ;;  %p1435_p11 = scmp.lt.s32.totalorder %s53_s14, %s53_s14 }
  0x1a   :  { %p1431_p10 = scmp.ne.s32.totalorder %s53_s14, %s1430_s15  ;;  %p1436_p12 = scmp.lt.s32.totalorder %s1430_s15, %s1430_s15 }
  0x1c   :  { %p1437_p13 = por %p1436_p12, %p1435_p11 }
  0x1e   :  { %p1438_p0 = pnand %p1437_p13, %p1431_p10 }
  0x20   :  { %1441 = shalt.err (!%p1438_p0)
}
  0x21   :  { %58 = dma.hbm_to_vmem [thread:$0]  %s1769_s6, 512, %s53_s14, [#allocation6], %s1470_s29, %s1470_s29, %s1471_s30  }
  0x22   :  { %1462 = dma.done.wait [#allocation3], 256  }
  0x23   :  { %1463 = vsyncadd [#allocation3], 4294967040 }
  0x24   :  { %1464 = dma.done.wait [#allocation6], 768  }
  0x25   :  { %1465 = vsyncadd [#allocation6], 4294966528  ;;  %v1473_v0 = vmov 0.0   ;;  %vm1474_vm0 = vmmov 0   ;;  %v1346_v1 = vld [vmem:[%s1764_s1 + $0x18] sm:$0xff]   ;;  %v1347_v2 = vld [vmem:[%s1764_s1 + $0x10] sm:$0xff]  }
  0x26   :  { %1216 = vmatprep.subr.bf16.mxu0 %v1473_v0  ;;  %1224 = vmatprep.mubr.msk.bf16.mxu0 %vm1474_vm0, %v1473_v0  ;;  %v1348_v3 = vld [vmem:[%s1764_s1 + $0x8] sm:$0xff]   ;;  %v1349_v4 = vld [vmem:[%s1764_s1] sm:$0xff]   ;;  %vm104_vm1 = vcmask 523264   ;;  %vm152_vm2 = vcmask 261120   ;;  %v1352_v36 = vld [vmem:[#allocation5 + $0x8] sm:$0xff]   ;;  %s1476_s9 = smov 32  }
  0x27   :  { %1228 = vmatprep.subr.bf16.mxu1 %v1473_v0  ;;  %1232 = vmatprep.mubr.msk.bf16.mxu1 %vm1474_vm0, %v1473_v0  ;;  %v69_v5 = vld [vmem:[%s1763_s0] sm:$0xff]  ;;  %v70_v6 = vld [vmem:[%s1763_s0 + $0x8] sm:$0xff]  ;;  %s1475_s0 = smov 96   ;;  %v1353_v37 = vld [vmem:[#allocation5] sm:$0xff]   ;;  %vm379_vm3 = vcmask 130048   ;;  %vm474_vm5 = vcmask 64512  }
  0x28   :  { %1217 = vmatpush3.bf16.msra.mxu0 %v1346_v1  ;;  %v71_v7 = vpack.c.bf16 %v70_v6, %v69_v5  ;;  %v1350_v16 = vld [vmem:[#allocation2 + $0x8] sm:$0xff]   ;;  %v1351_v17 = vld [vmem:[#allocation2] sm:$0xff]   ;;  %vm493_vm6 = vcmask 1043456  }
  0x29   :  { %1218 = vmatprep.subr.bf16.mxu0 %v1473_v0  ;;  %1229 = vmatpush3.bf16.msra.mxu1 %v1350_v16  ;;  %v1152_v31 = vld [vmem:[%s1765_s2] ss:$0 sm:$0xff]  ;;  %v1603_v52 = vld [vmem:[%s1768_s5 + $0x8] sm:$0xff] }
  0x2a   :  { %1230 = vmatprep.subr.bf16.mxu1 %v1473_v0  ;;  %v325_v51 = vld [vmem:[%s1768_s5] sm:$0xff]  ;;  %s1477_s5 = smov 112  }
  0x2c   :  { %1219 = vmatpush3.bf16.msra.mxu0 %v1347_v2 }
  0x2d   :  { %1220 = vmatprep.subr.bf16.mxu0 %v1473_v0  ;;  %1231 = vmatpush3.bf16.msra.mxu1 %v1351_v17 }
  0x2e   :  { %1236 = vmatprep.subr.bf16.mxu1 %v1473_v0 }
  0x30   :  { %1221 = vmatpush3.bf16.msra.mxu0 %v1348_v3 }
  0x31   :  { %1222 = vmatprep.subr.bf16.mxu0 %v1473_v0 }
  0x34   :  { %1223 = vmatpush3.bf16.msra.mxu0 %v1349_v4 }
  0x35   :  { %1256 = vmatprep.subr.bf16.mxu0 %v1473_v0 }
  0x37   :  { %1225 = vmatmul.mubr.msk.bf16.vlgmr.msra.gmra.mxu0 %vm104_vm1, %v71_v7 }
  0x38   :  { %1258 = vmatprep.mubr.msk.bf16.mxu0 %vm1474_vm0, %v1473_v0 }
  0xf7   :  { %v1567_v8 = vpop.f32.mrf.mxu0 }
  0xf8   :  { %v150_v9 = vmul.f32 %v1567_v8, %v1567_v8 }
  0xf9   :  { %v1226_v10 = vpop.f32.mrf.mxu0 }
  0xfa   :  { %178 = vrot.lane.b32.xlu1 %v150_v9, %s1475_s0  ;;  %v153_v11 = vsel %vm152_vm2, %v150_v9, 0.0 }
  0xfb   :  { %154 = vadd.xlane.f32.xlu0 %v153_v11  ;;  %v1573_v12 = vpop.f32.mrf.mxu0 }
  0xfc   :  { %v151_v13 = vmul.f32 %v1573_v12, %v1573_v12 }
  0xfd   :  { %v1227_v14 = vpop.f32.mrf.mxu0 }
  0xfe   :  { %180 = vrot.lane.b32.xlu1 %v151_v13, %s1475_s0  ;;  %v156_v15 = vsel %vm152_vm2, %v151_v13, 0.0 }
  0xff   :  { %157 = vadd.xlane.f32.xlu0 %v156_v15 }
 0x16c   :  { %v179_v18 = vpop.permute.xlu1 %178 }
 0x16d   :  { %v184_v19 = vsel %vm152_vm2, %v179_v18, 0.0 }
 0x16e   :  { %185 = vadd.xlane.f32.xlu0 %v184_v19 }
 0x170   :  { %v181_v20 = vpop.permute.xlu1 %180 }
 0x171   :  { %v187_v21 = vsel %vm152_vm2, %v181_v20, 0.0 }
 0x172   :  { %188 = vadd.xlane.f32.xlu1 %v187_v21 }
 0x184   :  { %v155_v22 = vpop.xlane.xlu0 %154 }
 0x185   :  { %v160_v23 = vmul.f32 0.03125, %v155_v22 }
 0x187   :  { %v162_v24 = vadd.f32 1e-06, %v160_v23  ;;  %v348_v23 = vlaneseq }
 0x188   :  { %v158_v25 = vpop.xlane.xlu0 %157 }
 0x189   :  { %1358 = vrsqrt.f32 %v162_v24  ;;  %v161_v26 = vmul.f32 0.03125, %v158_v25 }
 0x18b   :  { %v163_v27 = vadd.f32 1e-06, %v161_v26  ;;  %v1641_v26 = vshrl.u32 %v348_v23, 7 }
 0x18d   :  { %1360 = vrsqrt.f32 %v163_v27  ;;  %v1643_v27 = vand.u32 127, %v348_v23 }
 0x18f   :  { %vm352_vm4 = vcmp.le.s32.totalorder %v1643_v27, %v1641_v26 }
 0x196   :  { %v1359_v28 = vpop.eup %1358 }
 0x197   :  { %v166_v29 = vmul.f32 %v1359_v28, %v1567_v8 }
 0x199   :  { %v174_v33 = vmul.f32 %v1152_v31, %v166_v29 }
 0x19a   :  { %v1361_v30 = vpop.eup %1360 }
 0x19b   :  { %v167_v32 = vmul.f32 %v1361_v30, %v1573_v12 }
 0x19d   :  { %v175_v34 = vmul.f32 %v1152_v31, %v167_v32 }
 0x19f   :  { %v200_v35 = vpack.c.bf16 %v175_v34, %v174_v33 }
 0x1a1   :  { %1233 = vmatmul.mubr.msk.bf16.vlgmr.msra.gmra.mxu1 %vm152_vm2, %v200_v35 }
 0x1a2   :  { %1240 = vmatprep.mubr.msk.bf16.mxu1 %vm1474_vm0, %v1473_v0  ;;  %1237 = vmatpush3.bf16.msra.mxu1 %v1352_v36 }
 0x1a3   :  { %1238 = vmatprep.subr.bf16.mxu1 %v1473_v0 }
 0x1a6   :  { %1239 = vmatpush3.bf16.msra.mxu1 %v1353_v37 }
 0x1a7   :  { %1244 = vmatprep.subr.bf16.mxu1 %v1473_v0 }
 0x1f7   :  { %v186_v38 = vpop.xlane.xlu0 %185 }
 0x1f8   :  { %v190_v39 = vmul.f32 0.03125, %v186_v38 }
 0x1fa   :  { %v192_v40 = vadd.f32 1e-06, %v190_v39 }
 0x1fb   :  { %v189_v41 = vpop.xlane.xlu1 %188 }
 0x1fc   :  { %1362 = vrsqrt.f32 %v192_v40  ;;  %v191_v42 = vmul.f32 0.03125, %v189_v41 }
 0x1fe   :  { %v193_v43 = vadd.f32 1e-06, %v191_v42 }
 0x200   :  { %1364 = vrsqrt.f32 %v193_v43 }
 0x209   :  { %v1363_v44 = vpop.eup %1362 }
 0x20a   :  { %v196_v45 = vmul.f32 %v1363_v44, %v1567_v8 }
 0x20c   :  { %v198_v48 = vmul.f32 %v1152_v31, %v196_v45 }
 0x20d   :  { %v1365_v46 = vpop.eup %1364 }
 0x20e   :  { %v197_v47 = vmul.f32 %v1365_v46, %v1573_v12 }
 0x210   :  { %v199_v49 = vmul.f32 %v1152_v31, %v197_v47 }
 0x212   :  { %v261_v50 = vpack.c.bf16 %v199_v49, %v198_v48 }
 0x214   :  { %267 = vrot.lane.b32.xlu0 %v261_v50, %s1475_s0 }
 0x218   :  { %329 = vrot.lane.b32.xlu0 %v325_v51, %s1470_s29 }
 0x21c   :  { %331 = vrot.lane.b32.xlu0 %v1603_v52, %s1470_s29 }
 0x220   :  { %362 = vrot.lane.b32.xlu0 %v325_v51, %s1476_s9 }
 0x261   :  { %v254_v53 = vpop.f32.mrf.mxu1 }
 0x262   :  { %v361_v20 = vpack.c.bf16 %v254_v53, %v254_v53 }
 0x263   :  { %v1234_v54 = vpop.f32.mrf.mxu1 }
 0x265   :  { %v1608_v55 = vpop.f32.mrf.mxu1 }
 0x267   :  { %v1235_v56 = vpop.f32.mrf.mxu1 }
 0x286   :  { %v268_v57 = vpop.permute.xlu0 %267 }
 0x287   :  { %1241 = vmatmul.mubr.msk.bf16.vlgmr.msra.gmra.mxu1 %vm152_vm2, %v268_v57 }
 0x288   :  { %1246 = vmatprep.mubr.msk.bf16.mxu1 %vm1474_vm0, %v1473_v0 }
 0x28a   :  { %v330_v58 = vpop.permute.xlu0 %329 }
 0x28b   :  { %v335_v59 = vmul.f32 %v330_v58, %v1567_v8 }
 0x28d   :  { %339 = vrot.lane.b32.xlu1 %v335_v59, %s1477_s5 }
 0x28e   :  { %v332_v60 = vpop.permute.xlu0 %331 }
 0x28f   :  { %v336_v61 = vmul.f32 %v332_v60, %v1573_v12 }
 0x291   :  { %341 = vrot.lane.b32.xlu0 %v336_v61, %s1477_s5 }
 0x292   :  { %v363_v62 = vpop.permute.xlu0 %362 }
 0x293   :  { %v365_v63 = vmul.f32 %v363_v62, %v254_v53 }
 0x295   :  { %367 = vrot.lane.b32.xlu0 %v365_v63, %s1477_s5 }
 0x2ff   :  { %v340_v1 = vpop.permute.xlu1 %339 }
 0x300   :  { %v345_v3 = vadd.f32 %v340_v1, %v335_v59 }
 0x303   :  { %v342_v2 = vpop.permute.xlu0 %341 }
 0x304   :  { %v346_v4 = vadd.f32 %v342_v2, %v336_v61 }
 0x306   :  { %v1618_v5 = vpack.c.bf16 %v346_v4, %v345_v3 }
 0x307   :  { %v368_v6 = vpop.permute.xlu0 %367 }
 0x308   :  { %v370_v7 = vadd.f32 %v368_v6, %v365_v63  ;;  %377 = vrot.lane.b32.xlu0 %v1618_v5, %s1470_s29 }
 0x30a   :  { %v371_v8 = vpack.c.bf16 %v370_v7, %v370_v7 }
 0x30c   :  { %374 = vrot.lane.b32.xlu0 %v371_v8, %s1475_s0 }
 0x310   :  { %537 = vrot.lane.b32.xlu0 %v325_v51, %s1475_s0 }
 0x347   :  { %v318_v9 = vpop.f32.mrf.mxu1 }
 0x348   :  { %v1628_v16 = vpack.c.bf16 %v318_v9, %v318_v9 }
 0x349   :  { %v1242_v10 = vpop.f32.mrf.mxu1 }
 0x34a   :  { %v430_v19 = vsel %vm152_vm2, %v1628_v16, 0 }
 0x34b   :  { %v1624_v11 = vpop.f32.mrf.mxu1 }
 0x34d   :  { %v1243_v12 = vpop.f32.mrf.mxu1 }
 0x37a   :  { %v378_v13 = vpop.permute.xlu0 %377 }
 0x37b   :  { %v384_v14 = vsel %vm379_vm3, %v378_v13, 0 }
 0x37c   :  { %1245 = vmatpush3.bf16.xpose.msra.mxu1 %v384_v14 }
 0x37d   :  { %1250 = vmatprep.subr.bf16.mxu1 %v1473_v0 }
 0x37e   :  { %v375_v15 = vpop.permute.xlu0 %374 }
 0x382   :  { %v538_v17 = vpop.permute.xlu0 %537 }
 0x383   :  { %v540_v18 = vmul.f32 %v538_v17, %v254_v53  ;;  %1247 = vmatmul.mubr.msk.bf16.vlgmr.msra.gmra.mxu1 %vm379_vm3, %v375_v15 }
 0x384   :  { %1251 = vmatpush3.bf16.xpose.msra.mxu1 %v430_v19  ;;  %1252 = vmatprep.mubr.msk.bf16.mxu1 %vm1474_vm0, %v1473_v0 }
 0x385   :  { %542 = vrot.lane.b32.xlu0 %v540_v18, %s1477_s5  ;;  %1262 = vmatprep.subr.bf16.mxu1 %v1473_v0 }
 0x38b   :  { %1253 = vmatmul.mubr.msk.bf16.vlgmr.msra.gmra.mxu1 %vm152_vm2, %v361_v20 }
 0x38c   :  { %1263 = vmatpush3.bf16.xpose.msra.mxu1 %v384_v14  ;;  %1264 = vmatprep.mubr.msk.bf16.mxu1 %vm1474_vm0, %v1473_v0 }
 0x38d   :  { %1274 = vmatprep.subr.bf16.mxu1 %v1473_v0 }
 0x3f7   :  { %v543_v36 = vpop.permute.xlu0 %542 }
 0x3f8   :  { %v545_v37 = vadd.f32 %v543_v36, %v540_v18 }
 0x3fa   :  { %v546_v38 = vpack.c.bf16 %v545_v37, %v545_v37 }
 0x443   :  { %v420_v21 = vpop.f32.mrf.mxu1 }
 0x445   :  { %v1248_v22 = vpop.f32.mrf.mxu1 }
 0x447   :  { %v423_v24 = vpop.f32.mrf.mxu1 }
 0x448   :  { %v726_v24 = vrot.slane %v1618_v5, 4 }
 0x449   :  { %v1249_v25 = vpop.f32.mrf.mxu1 }
 0x44b   :  { %v466_v28 = vpop.f32.mrf.mxu1 }
 0x44c   :  { %v467_v29 = vadd.f32 %v466_v28, %v420_v21 }
 0x44d   :  { %v1254_v30 = vpop.f32.mrf.mxu1 }
 0x44e   :  { %v472_v31 = vmul.f32 0.14433756, %v467_v29 }
 0x44f   :  { %v469_v32 = vpop.f32.mrf.mxu1 }
 0x450   :  { %v473_v33 = vsel %vm352_vm4, %v472_v31, -3.4028235e+38 }
 0x451   :  { %v1255_v34 = vpop.f32.mrf.mxu1  ;;  %v475_v35 = vsel %vm474_vm5, %v473_v33, -inf }
 0x452   :  { %476 = vmax.xlane.f32.xlu1 %v475_v35  ;;  %v711_v35 = vpack.c.bf16 %v1608_v55, %v1608_v55 }
 0x463   :  { %488 = vrot.lane.b32.xlu1 %v1628_v16, %s1475_s0 }
 0x467   :  { %548 = vrot.lane.b32.xlu1 %v546_v38, %s1476_s9 }
 0x46b   :  { %594 = vrot.lane.b32.xlu1 %v361_v20, %s1470_s29 }
 0x4db   :  { %v477_v39 = vpop.xlane.xlu1 %476 }
 0x4dc   :  { %v478_v40 = vsub.f32 %v473_v33, %v477_v39 }
 0x4de   :  { %v479_v41 = vmul.f32 1.442695, %v478_v40 }
 0x4df   :  { %v489_v42 = vpop.permute.xlu1 %488 }
 0x4e0   :  { %1366 = vpow2.f32 %v479_v41  ;;  %v495_v43 = vsel %vm493_vm6, %v489_v42, 0 }
 0x4e1   :  { %1257 = vmatpush3.bf16.msra.mxu0 %v495_v43 }
 0x4e2   :  { %1268 = vmatprep.subr.bf16.mxu0 %v1473_v0 }
 0x4e3   :  { %v549_v44 = vpop.permute.xlu1 %548 }
 0x4e4   :  { %1265 = vmatmul.mubr.msk.bf16.vlgmr.msra.gmra.mxu1 %vm379_vm3, %v549_v44 }
 0x4e5   :  { %1276 = vmatprep.mubr.msk.bf16.mxu1 %vm1474_vm0, %v1473_v0 }
 0x4e7   :  { %v595_v57 = vpop.permute.xlu1 %594 }
 0x4ed   :  { %v1367_v45 = vpop.eup %1366 }
 0x4ee   :  { %v481_v46 = vsel %vm474_vm5, %v1367_v45, 0.0 }
 0x4ef   :  { %482 = vadd.xlane.f32.xlu0 %v481_v46 }
 0x505   :  { %596 = vrot.lane.b32.xlu0 %v1628_v16, %s1470_s29 }
 0x509   :  { %712 = vrot.lane.b32.xlu0 %v1603_v52, %s1476_s9 }
 0x578   :  { %v483_v47 = vpop.xlane.xlu0 %482 }
 0x579   :  { %1368 = vrcp.f32 %v483_v47 }
 0x57c   :  { %v597_v48 = vpop.permute.xlu0 %596 }
 0x57d   :  { %v602_v56 = vsel %vm152_vm2, %v597_v48, 0 }
 0x580   :  { %v713_v49 = vpop.permute.xlu0 %712 }
 0x581   :  { %v715_v50 = vmul.f32 %v713_v49, %v1608_v55 }
 0x583   :  { %717 = vrot.lane.b32.xlu0 %v715_v50, %s1477_s5 }
 0x586   :  { %v1369_v51 = vpop.eup %1368 }
 0x587   :  { %v485_v53 = vmul.f32 %v1369_v51, %v1367_v45 }
 0x589   :  { %v486_v54 = vpack.c.bf16 %v485_v53, %v485_v53 }
 0x58b   :  { %1259 = vmatmul.mubr.msk.bf16.vlgmr.msra.gmra.mxu0 %vm474_vm5, %v486_v54 }
 0x58c   :  { %1269 = vmatpush3.bf16.xpose.msra.mxu0 %v602_v56  ;;  %1270 = vmatprep.mubr.msk.bf16.mxu0 %vm1474_vm0, %v1473_v0 }
 0x58d   :  { %1280 = vmatprep.subr.bf16.mxu0 %v1473_v0 }
 0x593   :  { %1271 = vmatmul.mubr.msk.bf16.vlgmr.msra.gmra.mxu0 %vm152_vm2, %v595_v57 }
 0x594   :  { %1282 = vmatprep.mubr.msk.bf16.mxu0 %vm1474_vm0, %v1473_v0 }
 0x5a4   :  { %v587_v58 = vpop.f32.mrf.mxu1 }
 0x5a6   :  { %v1266_v59 = vpop.f32.mrf.mxu1 }
 0x5a8   :  { %v590_v60 = vpop.f32.mrf.mxu1 }
 0x5aa   :  { %v1267_v61 = vpop.f32.mrf.mxu1 }
 0x5f5   :  { %v718_v13 = vpop.permute.xlu0 %717 }
 0x5f6   :  { %v720_v14 = vadd.f32 %v718_v13, %v715_v50 }
 0x5f8   :  { %v721_v15 = vpack.c.bf16 %v720_v14, %v720_v14 }
 0x64b   :  { %v1675_v62 = vpop.f32.mrf.mxu0 }
 0x64d   :  { %v1260_v63 = vpop.f32.mrf.mxu0 }
 0x64f   :  { %v534_v1 = vpop.f32.mrf.mxu0 }
 0x651   :  { %v1261_v2 = vpop.f32.mrf.mxu0 }
 0x653   :  { %v638_v3 = vpop.f32.mrf.mxu0 }
 0x654   :  { %v639_v4 = vadd.f32 %v638_v3, %v587_v58 }
 0x655   :  { %v1272_v6 = vpop.f32.mrf.mxu0 }
 0x656   :  { %v644_v7 = vmul.f32 0.14433756, %v639_v4 }
 0x657   :  { %v641_v8 = vpop.f32.mrf.mxu0 }
 0x658   :  { %v645_v9 = vsel %vm352_vm4, %v644_v7, -3.4028235e+38 }
 0x659   :  { %v1273_v10 = vpop.f32.mrf.mxu0  ;;  %v646_v12 = vsel %vm474_vm5, %v645_v9, -inf }
 0x65a   :  { %647 = vmax.xlane.f32.xlu1 %v646_v12 }
 0x66b   :  { %658 = vrot.lane.b32.xlu1 %v1628_v16, %s1476_s9 }
 0x66f   :  { %724 = vrot.lane.b32.xlu1 %v721_v15, %s1475_s0 }
 0x6e3   :  { %v648_v17 = vpop.xlane.xlu1 %647 }
 0x6e4   :  { %v649_v18 = vsub.f32 %v645_v9, %v648_v17 }
 0x6e6   :  { %v650_v19 = vmul.f32 1.442695, %v649_v18 }
 0x6e7   :  { %v659_v20 = vpop.permute.xlu1 %658 }
 0x6e8   :  { %1370 = vpow2.f32 %v650_v19  ;;  %v664_v21 = vsel %vm493_vm6, %v659_v20, 0 }
 0x6e9   :  { %1275 = vmatpush3.bf16.msra.mxu1 %v664_v21 }
 0x6ea   :  { %1286 = vmatprep.subr.bf16.mxu1 %v1473_v0 }
 0x6eb   :  { %v725_v31 = vpop.permute.xlu1 %724 }
 0x6f5   :  { %v1371_v22 = vpop.eup %1370 }
 0x6f6   :  { %v652_v23 = vsel %vm474_vm5, %v1371_v22, 0.0 }
 0x6f7   :  { %653 = vadd.xlane.f32.xlu0 %v652_v23 }
 0x70d   :  { %727 = vrot.lane.b32.xlu0 %v726_v24, %s1470_s29 }
 0x711   :  { %884 = vrot.lane.b32.xlu0 %v1603_v52, %s1475_s0  ;;  %v1700_v52 = vpack.c.bf16 %v1624_v11, %v1624_v11 }
 0x713   :  { %v779_v34 = vsel %vm152_vm2, %v1700_v52, 0 }
 0x780   :  { %v654_v16 = vpop.xlane.xlu0 %653 }
 0x781   :  { %1372 = vrcp.f32 %v654_v16 }
 0x784   :  { %v728_v25 = vpop.permute.xlu0 %727 }
 0x785   :  { %v733_v28 = vsel %vm379_vm3, %v728_v25, 0 }
 0x786   :  { %1281 = vmatpush3.bf16.xpose.msra.mxu0 %v733_v28 }
 0x787   :  { %1292 = vmatprep.subr.bf16.mxu0 %v1473_v0 }
 0x788   :  { %v885_v29 = vpop.permute.xlu0 %884 }
 0x789   :  { %v887_v30 = vmul.f32 %v885_v29, %v1608_v55 }
 0x78b   :  { %889 = vrot.lane.b32.xlu0 %v887_v30, %s1477_s5 }
 0x78d   :  { %1283 = vmatmul.mubr.msk.bf16.vlgmr.msra.gmra.mxu0 %vm379_vm3, %v725_v31 }
 0x78e   :  { %v1373_v5 = vpop.eup %1372  ;;  %1294 = vmatprep.mubr.msk.bf16.mxu0 %vm1474_vm0, %v1473_v0 }
 0x78f   :  { %v656_v32 = vmul.f32 %v1373_v5, %v1371_v22 }
 0x791   :  { %v657_v33 = vpack.c.bf16 %v656_v32, %v656_v32 }
 0x793   :  { %1277 = vmatmul.mubr.msk.bf16.vlgmr.msra.gmra.mxu1 %vm474_vm5, %v657_v33 }
 0x794   :  { %1287 = vmatpush3.bf16.xpose.msra.mxu1 %v779_v34  ;;  %1288 = vmatprep.mubr.msk.bf16.mxu1 %vm1474_vm0, %v1473_v0 }
 0x795   :  { %1298 = vmatprep.subr.bf16.mxu1 %v1473_v0 }
 0x79b   :  { %1289 = vmatmul.mubr.msk.bf16.vlgmr.msra.gmra.mxu1 %vm152_vm2, %v711_v35 }
 0x79c   :  { %1299 = vmatpush3.bf16.xpose.msra.mxu1 %v733_v28  ;;  %1300 = vmatprep.mubr.msk.bf16.mxu1 %vm1474_vm0, %v1473_v0 }
 0x79d   :  { %1310 = vmatprep.subr.bf16.mxu1 %v1473_v0 }
 0x7fd   :  { %v890_v50 = vpop.permute.xlu0 %889 }
 0x7fe   :  { %v892_v51 = vadd.f32 %v890_v50, %v887_v30 }
 0x800   :  { %v893_v53 = vpack.c.bf16 %v892_v51, %v892_v51 }
 0x84d   :  { %v769_v11 = vpop.f32.mrf.mxu0 }
 0x84f   :  { %v1284_v36 = vpop.f32.mrf.mxu0 }
 0x850   :  { %v1355_v36 = vld [vmem:[#allocation7 + $0x10] sm:$0xff]  }
 0x851   :  { %v772_v37 = vpop.f32.mrf.mxu0 }
 0x852   :  { %v1356_v37 = vld [vmem:[#allocation7 + $0x8] sm:$0xff]  }
 0x853   :  { %v1714_v38 = vpop.f32.mrf.mxu1  ;;  %v1285_v39 = vpop.f32.mrf.mxu0 }
 0x855   :  { %v1278_v40 = vpop.f32.mrf.mxu1 }
 0x857   :  { %v703_v41 = vpop.f32.mrf.mxu1 }
 0x859   :  { %v1279_v42 = vpop.f32.mrf.mxu1 }
 0x85b   :  { %v815_v43 = vpop.f32.mrf.mxu1 }
 0x85c   :  { %v816_v44 = vadd.f32 %v815_v43, %v769_v11  ;;  %v1354_v11 = vld [vmem:[#allocation7 + $0x18] sm:$0xff]  }
 0x85d   :  { %v1290_v55 = vpop.f32.mrf.mxu1 }
 0x85e   :  { %v821_v45 = vmul.f32 0.14433756, %v816_v44 }
 0x85f   :  { %v818_v46 = vpop.f32.mrf.mxu1 }
 0x860   :  { %v822_v47 = vsel %vm352_vm4, %v821_v45, -3.4028235e+38 }
 0x861   :  { %v1291_v48 = vpop.f32.mrf.mxu1  ;;  %v823_v49 = vsel %vm474_vm5, %v822_v47, -inf }
 0x862   :  { %824 = vmax.xlane.f32.xlu1 %v823_v49 }
 0x873   :  { %836 = vrot.lane.b32.xlu1 %v1700_v52, %s1475_s0 }
 0x877   :  { %895 = vrot.lane.b32.xlu1 %v893_v53, %s1476_s9 }
 0x87b   :  { %941 = vrot.lane.b32.xlu1 %v711_v35, %s1470_s29 }
 0x8eb   :  { %v825_v54 = vpop.xlane.xlu1 %824 }
 0x8ec   :  { %v826_v56 = vsub.f32 %v822_v47, %v825_v54 }
 0x8ee   :  { %v827_v57 = vmul.f32 1.442695, %v826_v56 }
 0x8ef   :  { %v837_v58 = vpop.permute.xlu1 %836 }
 0x8f0   :  { %1374 = vpow2.f32 %v827_v57  ;;  %v842_v59 = vsel %vm493_vm6, %v837_v58, 0 }
 0x8f1   :  { %1293 = vmatpush3.bf16.msra.mxu0 %v842_v59 }
 0x8f2   :  { %1304 = vmatprep.subr.bf16.mxu0 %v1473_v0 }
 0x8f3   :  { %v896_v60 = vpop.permute.xlu1 %895 }
 0x8f4   :  { %1301 = vmatmul.mubr.msk.bf16.vlgmr.msra.gmra.mxu1 %vm379_vm3, %v896_v60 }
 0x8f5   :  { %1312 = vmatprep.mubr.msk.bf16.mxu1 %vm1474_vm0, %v1473_v0 }
 0x8f7   :  { %v942_v8 = vpop.permute.xlu1 %941 }
 0x8fd   :  { %v1375_v61 = vpop.eup %1374 }
 0x8fe   :  { %v829_v63 = vsel %vm474_vm5, %v1375_v61, 0.0 }
 0x8ff   :  { %830 = vadd.xlane.f32.xlu0 %v829_v63 }
 0x915   :  { %943 = vrot.lane.b32.xlu0 %v1700_v52, %s1470_s29  ;;  %s1478_s29 = smov [#allocation8]  }
 0x916   :  { %s1134_s10 = sshll.u32 %s1478_s29, 4  ;;  %s1135_s10 = int_to_ptr.vmem [resolvable:$true] %s1134_s10 }
 0x917   :  { %s1442_s11 = scalar_lea.vmem %s1135_s10, 256  ;;  %p1447_p2 = scmp.lt.s32.totalorder %s1135_s10, %s1135_s10 }
 0x918   :  { %p1443_p1 = scmp.ne.s32.totalorder %s1135_s10, %s1442_s11  ;;  %p1448_p3 = scmp.lt.s32.totalorder %s1442_s11, %s1442_s11 }
 0x91a   :  { %p1449_p4 = por %p1448_p3, %p1447_p2 }
 0x91c   :  { %p1450_p5 = pnand %p1449_p4, %p1443_p1 }
 0x988   :  { %v831_v1 = vpop.xlane.xlu0 %830 }
 0x989   :  { %1376 = vrcp.f32 %v831_v1 }
 0x98c   :  { %v944_v4 = vpop.permute.xlu0 %943 }
 0x98d   :  { %v949_v7 = vsel %vm152_vm2, %v944_v4, 0 }
 0x996   :  { %v1377_v2 = vpop.eup %1376 }
 0x997   :  { %v833_v3 = vmul.f32 %v1377_v2, %v1375_v61 }
 0x999   :  { %v834_v6 = vpack.c.bf16 %v833_v3, %v833_v3 }
 0x99b   :  { %1295 = vmatmul.mubr.msk.bf16.vlgmr.msra.gmra.mxu0 %vm474_vm5, %v834_v6 }
 0x99c   :  { %1305 = vmatpush3.bf16.xpose.msra.mxu0 %v949_v7  ;;  %1306 = vmatprep.mubr.msk.bf16.mxu0 %vm1474_vm0, %v1473_v0 }
 0x99d   :  { %1316 = vmatprep.subr.bf16.mxu0 %v1473_v0 }
 0x9a3   :  { %1307 = vmatmul.mubr.msk.bf16.vlgmr.msra.gmra.mxu0 %vm152_vm2, %v942_v8 }
 0x9a4   :  { %1324 = vmatprep.mubr.msk.bf16.mxu0 %vm1474_vm0, %v1473_v0  ;;  %1317 = vmatpush3.bf16.msra.mxu0 %v1354_v11 }
 0x9a5   :  { %1318 = vmatprep.subr.bf16.mxu0 %v1473_v0 }
 0x9a8   :  { %1319 = vmatpush3.bf16.msra.mxu0 %v1355_v36 }
 0x9a9   :  { %1320 = vmatprep.subr.bf16.mxu0 %v1473_v0 }
 0x9ac   :  { %1321 = vmatpush3.bf16.msra.mxu0 %v1356_v37 }
 0x9ad   :  { %1322 = vmatprep.subr.bf16.mxu0 %v1473_v0 }
 0x9b4   :  { %v934_v9 = vpop.f32.mrf.mxu1 }
 0x9b6   :  { %v1302_v10 = vpop.f32.mrf.mxu1 }
 0x9b8   :  { %v937_v12 = vpop.f32.mrf.mxu1 }
 0x9ba   :  { %v1303_v13 = vpop.f32.mrf.mxu1 }
 0xa5b   :  { %v878_v14 = vpop.f32.mrf.mxu0 }
 0xa5d   :  { %v1296_v15 = vpop.f32.mrf.mxu0 }
 0xa5f   :  { %v881_v17 = vpop.f32.mrf.mxu0 }
 0xa61   :  { %v1297_v18 = vpop.f32.mrf.mxu0 }
 0xa63   :  { %v985_v19 = vpop.f32.mrf.mxu0 }
 0xa64   :  { %v986_v20 = vadd.f32 %v985_v19, %v934_v9 }
 0xa65   :  { %v1308_v21 = vpop.f32.mrf.mxu0 }
 0xa66   :  { %v991_v22 = vmul.f32 0.14433756, %v986_v20 }
 0xa67   :  { %v988_v23 = vpop.f32.mrf.mxu0 }
 0xa68   :  { %v992_v24 = vsel %vm352_vm4, %v991_v22, -3.4028235e+38 }
 0xa69   :  { %v1309_v16 = vpop.f32.mrf.mxu0  ;;  %v993_v25 = vsel %vm474_vm5, %v992_v24, -inf }
 0xa6a   :  { %994 = vmax.xlane.f32.xlu1 %v993_v25 }
 0xaf3   :  { %v995_v28 = vpop.xlane.xlu1 %994 }
 0xaf4   :  { %v996_v29 = vsub.f32 %v992_v24, %v995_v28 }
 0xaf6   :  { %v997_v30 = vmul.f32 1.442695, %v996_v29 }
 0xaf8   :  { %1378 = vpow2.f32 %v997_v30 }
 0xb05   :  { %v1379_v31 = vpop.eup %1378 }
 0xb06   :  { %v999_v5 = vsel %vm474_vm5, %v1379_v31, 0.0 }
 0xb07   :  { %1000 = vadd.xlane.f32.xlu0 %v999_v5 }
 0xb1d   :  { %1005 = vrot.lane.b32.xlu0 %v1700_v52, %s1476_s9  ;;  %v1357_v52 = vld [vmem:[#allocation7] sm:$0xff]  }
 0xb1e   :  { %1323 = vmatpush3.bf16.msra.mxu0 %v1357_v52 }
 0xb90   :  { %v1001_v32 = vpop.xlane.xlu0 %1000 }
 0xb91   :  { %1380 = vrcp.f32 %v1001_v32 }
 0xb94   :  { %v1006_v33 = vpop.permute.xlu0 %1005 }
 0xb95   :  { %v1011_v26 = vsel %vm493_vm6, %v1006_v33, 0 }
 0xb96   :  { %1311 = vmatpush3.bf16.msra.mxu1 %v1011_v26 }
 0xb9e   :  { %v1381_v27 = vpop.eup %1380 }
 0xb9f   :  { %v1003_v34 = vmul.f32 %v1381_v27, %v1379_v31 }
 0xba1   :  { %v1004_v35 = vpack.c.bf16 %v1003_v34, %v1003_v34 }
 0xba3   :  { %1313 = vmatmul.mubr.msk.bf16.vlgmr.msra.gmra.mxu1 %vm474_vm5, %v1004_v35 }
 0xc63   :  { %v1047_v39 = vpop.f32.mrf.mxu1 }
 0xc64   :  { %v1341_v40 = vpack.i.bf16 %v1047_v39, %v1714_v38 }
 0xc65   :  { %v1314_v41 = vpop.f32.mrf.mxu1 }
 0xc66   :  { %1342 = vrot.lane.b32.xlu1 %v1341_v40, %s1476_s9 }
 0xc67   :  { %v1050_v42 = vpop.f32.mrf.mxu1 }
 0xc69   :  { %v1315_v43 = vpop.f32.mrf.mxu1 }
 0xcd8   :  { %v1343_v44 = vpop.permute.xlu1 %1342 }
 0xcd9   :  { %v1345_v55 = vunpack.i.h.bf16 %v1343_v44  ;;  %v1344_v45 = vunpack.i.l.bf16 %v1343_v44 }
 0xcdb   :  { %v1057_v46 = vsel %vm152_vm2, %v878_v14, %v1345_v55  ;;  %v710_v47 = vsel %vm152_vm2, %v1675_v62, %v1344_v45 }
 0xcdc   :  { %v1058_v48 = vpack.c.bf16 %v1057_v46, %v710_v47 }
 0xcde   :  { %1325 = vmatmul.mubr.msk.bf16.vlgmr.msra.gmra.mxu0 %vm104_vm1, %v1058_v48 }
 0xd9e   :  { %v1120_v0 = vpop.f32.mrf.mxu0 }
 0xd9f   :  { %1127 = vst.msk [vmem:[#allocation8] sm:$0xff] %vm104_vm1, %v1120_v0 }
 0xda0   :  { %v1326_v38 = vpop.f32.mrf.mxu0 }
 0xda2   :  { %v1123_v49 = vpop.f32.mrf.mxu0 }
 0xda3   :  { %1128 = vst.msk [vmem:[#allocation8 + $0x8] sm:$0xff] %vm104_vm1, %v1123_v49 }
 0xda4   :  { %v1327_v50 = vpop.f32.mrf.mxu0 }
 0xda5   :  { %1453 = shalt.err (!%p1450_p5)
}
 0xda6   :  { %s1479_s12 = smov 128   ;;  %s1480_s13 = smov 8  }
 0xda7   :  { %1140 = dma.vmem_to_hbm [thread:$0]  %s1135_s10, 256, %s1770_s7, [#allocation4], %s1479_s12, %s1479_s12, %s1480_s13  }
 0xda8   :  { %1466 = dma.done.wait [#allocation4], 256  }
 0xda9   :  { %1467 = vsyncadd [#allocation4], 4294967040 }
 0xdaa   :  { %1144 = vsyncpa [#allocation3], 1 }
 0xdab   :  { %1145 = vsyncpa [#allocation6], 1 }
 0xdac   :  { %1146 = vsyncpa [#allocation4], 1 }

</bundles_post_ra>
